<compile_context>
chip_gen: v7x
topology: tpu7x:2x2x1
jax: 0.10.0
libtpu: 0.0.40
codegen_flags: <defaults>
</compile_context>

<pallas_src>
import jax
import jax.numpy as jnp
from jax.experimental import pallas as pl
from jax.experimental.pallas import tpu as pltpu


def _round_up(n, m):
    return ((n + m - 1) // m) * m


# --------------------------------------------------------------------------- #
# Kernel
# --------------------------------------------------------------------------- #
def autoencoder_kernel(x_ref,                    # (TB, D)  f32 activation tile
                       w1_ref, b1_ref,           # (D, Ip)  bf16, (1, Ip) f32
                       w2_ref, b2_ref,           # (Ip, Zp) bf16, (1, Zp) f32
                       w3_ref, b3_ref,           # (Zp, Ip) bf16, (1, Ip) f32
                       w4_ref, b4_ref,           # (Ip, D)  bf16, (1, D)  f32
                       out_ref):                 # (TB, D)  f32
    # f32 -> bf16 cast happens here on the VMEM-resident tile (no extra HBM pass).
    x = x_ref[...].astype(jnp.bfloat16)

    # ---- DenseEncoder: fc1 -> relu -> fc2 -> relu ----
    h = jnp.dot(x, w1_ref[...], preferred_element_type=jnp.float32) + b1_ref[...]
    h = jnp.maximum(h, 0.0).astype(jnp.bfloat16)
    z = jnp.dot(h, w2_ref[...], preferred_element_type=jnp.float32) + b2_ref[...]
    z = jnp.maximum(z, 0.0).astype(jnp.bfloat16)

    # ---- DenseDecoder: fc1 -> relu -> fc2 -> sigmoid ----
    g = jnp.dot(z, w3_ref[...], preferred_element_type=jnp.float32) + b3_ref[...]
    g = jnp.maximum(g, 0.0).astype(jnp.bfloat16)
    logits = jnp.dot(g, w4_ref[...], preferred_element_type=jnp.float32) + b4_ref[...]

    out_ref[...] = jax.nn.sigmoid(logits)


# --------------------------------------------------------------------------- #
# One-time parameter preparation (hoisted out of the forward path)
# --------------------------------------------------------------------------- #
def prepare_params(params):
    """Pad I/Z to lane multiples of 128 and cast weights to bf16 (biases stay f32).
    Exact: padded w/b entries are zero, relu(0)=0, zero rows/cols contribute nothing."""
    D, I = params["w1"].shape
    Z = params["w2"].shape[1]
    Ip, Zp = _round_up(I, 128), _round_up(Z, 128)

    def padw(w, r, c):
        return jnp.pad(w, ((0, r - w.shape[0]), (0, c - w.shape[1]))).astype(jnp.bfloat16)

    def padb(b, c):
        return jnp.pad(b, ((0, 0), (0, c - b.shape[1]))).astype(jnp.float32)

    return {
        "w1": padw(params["w1"], D, Ip), "b1": padb(params["b1"], Ip),
        "w2": padw(params["w2"], Ip, Zp), "b2": padb(params["b2"], Zp),
        "w3": padw(params["w3"], Zp, Ip), "b3": padb(params["b3"], Ip),
        "w4": padw(params["w4"], Ip, D), "b4": padb(params["b4"], D),
    }


def _vmem_capacity_bytes():
    try:
        return int(pltpu.get_tpu_info().vmem_capacity_bytes)
    except Exception:
        return 64 * 1024 * 1024          # conservative: v7x per-TensorCore VMEM


# --------------------------------------------------------------------------- #
# Forward wrapper
# --------------------------------------------------------------------------- #
def autoencoder_forward(x, prepped, input_shape, tb_target=512):
    """x: (B, C, H, W) f32.  prepped: output of prepare_params.  -> (B, C, H, W) f32."""
    B = x.shape[0]
    C, H, W = input_shape
    D = int(C * H * W)
    Ip = prepped["w1"].shape[1]
    Zp = prepped["w2"].shape[1]
    assert prepped["w1"].shape[0] == D

    x_flat = x.reshape(B, D)             # f32; no pad/cast pre-pass (kernel is HBM-bound)

    # --- batch tiling / VMEM budget -----------------------------------------
    vmem_cap = (_vmem_capacity_bytes() * 3) // 4               # per-core headroom
    weight_bytes1 = 2 * (D * Ip + Ip * Zp + Zp * Ip + Ip * D) + 4 * (2 * Ip + Zp + D)

    def tile_bytes(tb):
        io = 4 * tb * D * 4                                    # double-buffered f32 in+out
        interm = tb * D * 10 + tb * Ip * 12 + tb * Zp * 6      # in-kernel temporaries
        return io + interm

    if B <= 16:
        TB = B                                                 # single full-batch tile
    elif B <= tb_target:
        TB = _round_up(pl.cdiv(B, 2), 8)                       # >=2 steps: feed both v7x TCs
    else:
        TB = _round_up(tb_target, 8)
    # Shrink TB if tile footprint plus resident weights would overflow VMEM.
    while TB > 8 and weight_bytes1 + tile_bytes(TB) + (4 << 20) > vmem_cap:
        TB = max(8, _round_up(TB // 2, 8))
    # TODO(synk): for very large D (>~16K on v7x) a D-tiled variant (K-accumulate fc1,
    # N-tile fc2/out) is needed instead of holding full w1/w4 + (TB, D) tiles resident.

    Bp = B if TB == B else _round_up(B, TB)
    if Bp != B:
        x_flat = jnp.pad(x_flat, ((0, Bp - B), (0, 0)))        # rows only; D never padded

    grid = (Bp // TB,)
    resident = lambda i: (0, 0)                                # weights: same block every step

    def run(single_buffer_weights):
        if single_buffer_weights:
            wspec = lambda shp: pl.BlockSpec(shp, resident, pipeline_mode=pl.Buffered(1))
            wfactor = 1
        else:
            wspec = lambda shp: pl.BlockSpec(shp, resident)
            wfactor = 2
        vmem_bytes = min(vmem_cap,
                         max(16 << 20,
                             wfactor * weight_bytes1 + tile_bytes(TB) + (4 << 20)))
        out = pl.pallas_call(
            autoencoder_kernel,
            out_shape=jax.ShapeDtypeStruct((Bp, D), jnp.float32),
            grid_spec=pltpu.PrefetchScalarGridSpec(
                num_scalar_prefetch=0,
                grid=grid,
                in_specs=[
                    pl.BlockSpec((TB, D), lambda i: (i, 0)),   # activations tile (f32)
                    wspec((D, Ip)), wspec((1, Ip)),            # w1, b1
                    wspec((Ip, Zp)), wspec((1, Zp)),           # w2, b2
                    wspec((Zp, Ip)), wspec((1, Ip)),           # w3, b3
                    wspec((Ip, D)), wspec((1, D)),             # w4, b4
                ],
                out_specs=pl.BlockSpec((TB, D), lambda i: (i, 0)),
            ),
            compiler_params=pltpu.CompilerParams(
                dimension_semantics=("parallel",),
                vmem_limit_bytes=int(vmem_bytes),
            ),
        )(x_flat,
          prepped["w1"], prepped["b1"], prepped["w2"], prepped["b2"],
          prepped["w3"], prepped["b3"], prepped["w4"], prepped["b4"])
        return jax.block_until_ready(out)

    try:
        out = run(single_buffer_weights=True)
    except Exception:
        # pipeline_mode not supported by this JAX/Mosaic build -> default buffering.
        out = run(single_buffer_weights=False)

    if Bp != B:
        out = out[:B]
    return out.reshape(B, C, H, W)


# --------------------------------------------------------------------------- #
# Synthetic init + pure-JAX reference
# --------------------------------------------------------------------------- #
def init_params(key, input_shape, bottleneck_size):
    """Deterministic synthetic init (uniform, PyTorch-Linear-style bounds), f32.
    Weights stored as (in_features, out_features) so the kernel computes x @ W + b."""
    D = int(input_shape[0] * input_shape[1] * input_shape[2])
    I = max(64, bottleneck_size)   # intermediate_size
    Z = bottleneck_size

    def linear(k, fan_in, fan_out):
        kw, kb = jax.random.split(k)
        bound = 1.0 / jnp.sqrt(float(fan_in))
        w = jax.random.uniform(kw, (fan_in, fan_out), jnp.float32, -bound, bound)
        b = jax.random.uniform(kb, (1, fan_out), jnp.float32, -bound, bound)
        return w, b

    k1, k2, k3, k4 = jax.random.split(key, 4)
    w1, b1 = linear(k1, D, I)   # encoder fc1
    w2, b2 = linear(k2, I, Z)   # encoder fc2
    w3, b3 = linear(k3, Z, I)   # decoder fc1
    w4, b4 = linear(k4, I, D)   # decoder fc2
    return {"w1": w1, "b1": b1, "w2": w2, "b2": b2,
            "w3": w3, "b3": b3, "w4": w4, "b4": b4}


def reference_forward(x, params, input_shape):
    """Pure-JAX reference mirroring the kernel's bf16-weight / f32-accumulate math."""
    B = x.shape[0]
    D = int(input_shape[0] * input_shape[1] * input_shape[2])
    xf = x.reshape(B, D).astype(jnp.bfloat16)
    w1 = params["w1"].astype(jnp.bfloat16)
    w2 = params["w2"].astype(jnp.bfloat16)
    w3 = params["w3"].astype(jnp.bfloat16)
    w4 = params["w4"].astype(jnp.bfloat16)
    h = jnp.maximum(jnp.dot(xf, w1, preferred_element_type=jnp.float32)
                    + params["b1"], 0.0).astype(jnp.bfloat16)
    z = jnp.maximum(jnp.dot(h, w2, preferred_element_type=jnp.float32)
                    + params["b2"], 0.0).astype(jnp.bfloat16)
    g = jnp.maximum(jnp.dot(z, w3, preferred_element_type=jnp.float32)
                    + params["b3"], 0.0).astype(jnp.bfloat16)
    y = jax.nn.sigmoid(jnp.dot(g, w4, preferred_element_type=jnp.float32)
                       + params["b4"])
    return y.reshape(B, *input_shape)


if __name__ == "__main__":
    # Small shapes consistent with the module (dense path).
    input_shape = (1, 16, 16)      # prod = 256
    bottleneck_size = 32           # intermediate_size = max(64, 32) = 64
    batch = 2

    key = jax.random.PRNGKey(0)
    kx, kp = jax.random.split(key)
    x = jax.random.normal(kx, (batch,) + input_shape, dtype=jnp.float32)
    params = init_params(kp, input_shape, bottleneck_size)
    prepped = prepare_params(params)       # one-time weight prep (hoisted out of forward)

    y = autoencoder_forward(x, prepped, input_shape)
    y = jax.block_until_ready(y)

    y_ref = reference_forward(x, params, input_shape)
    assert y.shape == (batch,) + input_shape
    err = float(jnp.max(jnp.abs(y - y_ref)))
    assert jnp.allclose(y, y_ref, atol=5e-3, rtol=5e-3), err

    print("KERNEL_OK")
</pallas_src>

<mosaic_0001>
module attributes {stable_mosaic.version = 11 : i64} {
  func.func @autoencoder_kernel(%arg0: i32, %arg1: memref<2x256xf32, #tpu.memory_space<vmem>>, %arg2: memref<256x128xbf16, #tpu.memory_space<vmem>>, %arg3: memref<1x128xf32, #tpu.memory_space<vmem>>, %arg4: memref<128x128xbf16, #tpu.memory_space<vmem>>, %arg5: memref<1x128xf32, #tpu.memory_space<vmem>>, %arg6: memref<128x128xbf16, #tpu.memory_space<vmem>>, %arg7: memref<1x128xf32, #tpu.memory_space<vmem>>, %arg8: memref<128x256xbf16, #tpu.memory_space<vmem>>, %arg9: memref<1x256xf32, #tpu.memory_space<vmem>>, %arg10: memref<2x256xf32, #tpu.memory_space<vmem>>) attributes {dimension_semantics = [#tpu.dimension_semantics<parallel>], iteration_bounds = array<i64: 1>, scalar_prefetch = 0 : i64, scratch_operands = 0 : i64, tpu.core_type = #tpu.core_type<tc>, window_params = [{transform_indices = @transform_0, window_bounds = array<i64: 2, 256>}, {pipeline_mode = #tpu.pipeline_mode<synchronous>, transform_indices = @transform_1, window_bounds = array<i64: 256, 128>}, {pipeline_mode = #tpu.pipeline_mode<synchronous>, transform_indices = @transform_2, window_bounds = array<i64: 1, 128>}, {pipeline_mode = #tpu.pipeline_mode<synchronous>, transform_indices = @transform_3, window_bounds = array<i64: 128, 128>}, {pipeline_mode = #tpu.pipeline_mode<synchronous>, transform_indices = @transform_4, window_bounds = array<i64: 1, 128>}, {pipeline_mode = #tpu.pipeline_mode<synchronous>, transform_indices = @transform_5, window_bounds = array<i64: 128, 128>}, {pipeline_mode = #tpu.pipeline_mode<synchronous>, transform_indices = @transform_6, window_bounds = array<i64: 1, 128>}, {pipeline_mode = #tpu.pipeline_mode<synchronous>, transform_indices = @transform_7, window_bounds = array<i64: 128, 256>}, {pipeline_mode = #tpu.pipeline_mode<synchronous>, transform_indices = @transform_8, window_bounds = array<i64: 1, 256>}, {transform_indices = @transform_9, window_bounds = array<i64: 2, 256>}]} {
    %c0 = arith.constant 0 : index
    %c0_0 = arith.constant 0 : index
    %0 = vector.load %arg1[%c0, %c0_0] : memref<2x256xf32, #tpu.memory_space<vmem>>, vector<2x256xf32>
    %1 = arith.truncf %0 : vector<2x256xf32> to vector<2x256xbf16>
    %c0_1 = arith.constant 0 : index
    %c0_2 = arith.constant 0 : index
    %2 = vector.load %arg2[%c0_1, %c0_2] : memref<256x128xbf16, #tpu.memory_space<vmem>>, vector<256x128xbf16>
    %cst = arith.constant dense<0.000000e+00> : vector<2x128xf32>
    %3 = tpu.matmul %1, %2, %cst {dimension_numbers = #tpu.dot_dimension_numbers<[1], [0], [0], [1], [0, 0, 1, 1], [], []>} : vector<2x256xbf16>, vector<256x128xbf16>, vector<2x128xf32> -> vector<2x128xf32>
    %c0_3 = arith.constant 0 : index
    %c0_4 = arith.constant 0 : index
    %4 = vector.load %arg3[%c0_3, %c0_4] : memref<1x128xf32, #tpu.memory_space<vmem>>, vector<1x128xf32>
    %5 = vector.broadcast %4 : vector<1x128xf32> to vector<2x128xf32>
    %6 = arith.addf %3, %5 : vector<2x128xf32>
    %cst_5 = arith.constant 0.000000e+00 : f32
    %7 = vector.broadcast %cst_5 : f32 to vector<2x128xf32>
    %8 = arith.maximumf %6, %7 : vector<2x128xf32>
    %9 = arith.truncf %8 : vector<2x128xf32> to vector<2x128xbf16>
    %c0_6 = arith.constant 0 : index
    %c0_7 = arith.constant 0 : index
    %10 = vector.load %arg4[%c0_6, %c0_7] : memref<128x128xbf16, #tpu.memory_space<vmem>>, vector<128x128xbf16>
    %cst_8 = arith.constant dense<0.000000e+00> : vector<2x128xf32>
    %11 = tpu.matmul %9, %10, %cst_8 {dimension_numbers = #tpu.dot_dimension_numbers<[1], [0], [0], [1], [0, 0, 1, 1], [], []>} : vector<2x128xbf16>, vector<128x128xbf16>, vector<2x128xf32> -> vector<2x128xf32>
    %c0_9 = arith.constant 0 : index
    %c0_10 = arith.constant 0 : index
    %12 = vector.load %arg5[%c0_9, %c0_10] : memref<1x128xf32, #tpu.memory_space<vmem>>, vector<1x128xf32>
    %13 = vector.broadcast %12 : vector<1x128xf32> to vector<2x128xf32>
    %14 = arith.addf %11, %13 : vector<2x128xf32>
    %cst_11 = arith.constant 0.000000e+00 : f32
    %15 = vector.broadcast %cst_11 : f32 to vector<2x128xf32>
    %16 = arith.maximumf %14, %15 : vector<2x128xf32>
    %17 = arith.truncf %16 : vector<2x128xf32> to vector<2x128xbf16>
    %c0_12 = arith.constant 0 : index
    %c0_13 = arith.constant 0 : index
    %18 = vector.load %arg6[%c0_12, %c0_13] : memref<128x128xbf16, #tpu.memory_space<vmem>>, vector<128x128xbf16>
    %cst_14 = arith.constant dense<0.000000e+00> : vector<2x128xf32>
    %19 = tpu.matmul %17, %18, %cst_14 {dimension_numbers = #tpu.dot_dimension_numbers<[1], [0], [0], [1], [0, 0, 1, 1], [], []>} : vector<2x128xbf16>, vector<128x128xbf16>, vector<2x128xf32> -> vector<2x128xf32>
    %c0_15 = arith.constant 0 : index
    %c0_16 = arith.constant 0 : index
    %20 = vector.load %arg7[%c0_15, %c0_16] : memref<1x128xf32, #tpu.memory_space<vmem>>, vector<1x128xf32>
    %21 = vector.broadcast %20 : vector<1x128xf32> to vector<2x128xf32>
    %22 = arith.addf %19, %21 : vector<2x128xf32>
    %cst_17 = arith.constant 0.000000e+00 : f32
    %23 = vector.broadcast %cst_17 : f32 to vector<2x128xf32>
    %24 = arith.maximumf %22, %23 : vector<2x128xf32>
    %25 = arith.truncf %24 : vector<2x128xf32> to vector<2x128xbf16>
    %c0_18 = arith.constant 0 : index
    %c0_19 = arith.constant 0 : index
    %26 = vector.load %arg8[%c0_18, %c0_19] : memref<128x256xbf16, #tpu.memory_space<vmem>>, vector<128x256xbf16>
    %cst_20 = arith.constant dense<0.000000e+00> : vector<2x256xf32>
    %27 = tpu.matmul %25, %26, %cst_20 {dimension_numbers = #tpu.dot_dimension_numbers<[1], [0], [0], [1], [0, 0, 1, 1], [], []>} : vector<2x128xbf16>, vector<128x256xbf16>, vector<2x256xf32> -> vector<2x256xf32>
    %c0_21 = arith.constant 0 : index
    %c0_22 = arith.constant 0 : index
    %28 = vector.load %arg9[%c0_21, %c0_22] : memref<1x256xf32, #tpu.memory_space<vmem>>, vector<1x256xf32>
    %29 = vector.broadcast %28 : vector<1x256xf32> to vector<2x256xf32>
    %30 = arith.addf %27, %29 : vector<2x256xf32>
    %31 = arith.negf %30 : vector<2x256xf32>
    %32 = math.exp %31 : vector<2x256xf32>
    %cst_23 = arith.constant 1.000000e+00 : f32
    %33 = vector.broadcast %cst_23 : f32 to vector<2x256xf32>
    %34 = arith.addf %33, %32 : vector<2x256xf32>
    %35 = arith.divf %33, %34 : vector<2x256xf32>
    %c0_24 = arith.constant 0 : index
    %c0_25 = arith.constant 0 : index
    %36 = vector.load %arg10[%c0_24, %c0_25] : memref<2x256xf32, #tpu.memory_space<vmem>>, vector<2x256xf32>
    tpu.vector_store %arg10[%c0_24, %c0_25], %35 {strides = array<i32>} : memref<2x256xf32, #tpu.memory_space<vmem>>, vector<2x256xf32>,
    return
  }
  func.func @transform_0(%arg0: i32) -> (i32, i32) {
    %c0_i32 = arith.constant 0 : i32
    %c0_i32_0 = arith.constant 0 : i32
    return %arg0, %c0_i32 : i32, i32
  }
  func.func @transform_1(%arg0: i32) -> (i32, i32) {
    %c0_i32 = arith.constant 0 : i32
    %c0_i32_0 = arith.constant 0 : i32
    %c0_i32_1 = arith.constant 0 : i32
    return %c0_i32, %c0_i32_0 : i32, i32
  }
  func.func @transform_2(%arg0: i32) -> (i32, i32) {
    %c0_i32 = arith.constant 0 : i32
    %c0_i32_0 = arith.constant 0 : i32
    %c0_i32_1 = arith.constant 0 : i32
    return %c0_i32, %c0_i32_0 : i32, i32
  }
  func.func @transform_3(%arg0: i32) -> (i32, i32) {
    %c0_i32 = arith.constant 0 : i32
    %c0_i32_0 = arith.constant 0 : i32
    %c0_i32_1 = arith.constant 0 : i32
    return %c0_i32, %c0_i32_0 : i32, i32
  }
  func.func @transform_4(%arg0: i32) -> (i32, i32) {
    %c0_i32 = arith.constant 0 : i32
    %c0_i32_0 = arith.constant 0 : i32
    %c0_i32_1 = arith.constant 0 : i32
    return %c0_i32, %c0_i32_0 : i32, i32
  }
  func.func @transform_5(%arg0: i32) -> (i32, i32) {
    %c0_i32 = arith.constant 0 : i32
    %c0_i32_0 = arith.constant 0 : i32
    %c0_i32_1 = arith.constant 0 : i32
    return %c0_i32, %c0_i32_0 : i32, i32
  }
  func.func @transform_6(%arg0: i32) -> (i32, i32) {
    %c0_i32 = arith.constant 0 : i32
    %c0_i32_0 = arith.constant 0 : i32
    %c0_i32_1 = arith.constant 0 : i32
    return %c0_i32, %c0_i32_0 : i32, i32
  }
  func.func @transform_7(%arg0: i32) -> (i32, i32) {
    %c0_i32 = arith.constant 0 : i32
    %c0_i32_0 = arith.constant 0 : i32
    %c0_i32_1 = arith.constant 0 : i32
    return %c0_i32, %c0_i32_0 : i32, i32
  }
  func.func @transform_8(%arg0: i32) -> (i32, i32) {
    %c0_i32 = arith.constant 0 : i32
    %c0_i32_0 = arith.constant 0 : i32
    %c0_i32_1 = arith.constant 0 : i32
    return %c0_i32, %c0_i32_0 : i32, i32
  }
  func.func @transform_9(%arg0: i32) -> (i32, i32) {
    %c0_i32 = arith.constant 0 : i32
    %c0_i32_0 = arith.constant 0 : i32
    return %arg0, %c0_i32 : i32, i32
  }
}

module attributes {stable_mosaic.version = 11 : i64} {
  func.func @autoencoder_kernel(%arg0: i32, %arg1: memref<2x256xf32, #tpu.memory_space<vmem>>, %arg2: memref<256x128xbf16, #tpu.memory_space<vmem>>, %arg3: memref<1x128xf32, #tpu.memory_space<vmem>>, %arg4: memref<128x128xbf16, #tpu.memory_space<vmem>>, %arg5: memref<1x128xf32, #tpu.memory_space<vmem>>, %arg6: memref<128x128xbf16, #tpu.memory_space<vmem>>, %arg7: memref<1x128xf32, #tpu.memory_space<vmem>>, %arg8: memref<128x256xbf16, #tpu.memory_space<vmem>>, %arg9: memref<1x256xf32, #tpu.memory_space<vmem>>, %arg10: memref<2x256xf32, #tpu.memory_space<vmem>>) attributes {dimension_semantics = [#tpu.dimension_semantics<parallel>], iteration_bounds = array<i64: 1>, scalar_prefetch = 0 : i64, scratch_operands = 0 : i64, tpu.core_type = #tpu.core_type<tc>, window_params = [{transform_indices = @transform_0, window_bounds = array<i64: 2, 256>}, {pipeline_mode = #tpu.pipeline_mode<synchronous>, transform_indices = @transform_1, window_bounds = array<i64: 256, 128>}, {pipeline_mode = #tpu.pipeline_mode<synchronous>, transform_indices = @transform_2, window_bounds = array<i64: 1, 128>}, {pipeline_mode = #tpu.pipeline_mode<synchronous>, transform_indices = @transform_3, window_bounds = array<i64: 128, 128>}, {pipeline_mode = #tpu.pipeline_mode<synchronous>, transform_indices = @transform_4, window_bounds = array<i64: 1, 128>}, {pipeline_mode = #tpu.pipeline_mode<synchronous>, transform_indices = @transform_5, window_bounds = array<i64: 128, 128>}, {pipeline_mode = #tpu.pipeline_mode<synchronous>, transform_indices = @transform_6, window_bounds = array<i64: 1, 128>}, {pipeline_mode = #tpu.pipeline_mode<synchronous>, transform_indices = @transform_7, window_bounds = array<i64: 128, 256>}, {pipeline_mode = #tpu.pipeline_mode<synchronous>, transform_indices = @transform_8, window_bounds = array<i64: 1, 256>}, {transform_indices = @transform_9, window_bounds = array<i64: 2, 256>}]} {
    %c0 = arith.constant 0 : index
    %c0_0 = arith.constant 0 : index
    %0 = vector.load %arg1[%c0, %c0_0] : memref<2x256xf32, #tpu.memory_space<vmem>>, vector<2x256xf32>
    %1 = arith.truncf %0 : vector<2x256xf32> to vector<2x256xbf16>
    %c0_1 = arith.constant 0 : index
    %c0_2 = arith.constant 0 : index
    %2 = vector.load %arg2[%c0_1, %c0_2] : memref<256x128xbf16, #tpu.memory_space<vmem>>, vector<256x128xbf16>
    %cst = arith.constant dense<0.000000e+00> : vector<2x128xf32>
    %3 = tpu.matmul %1, %2, %cst {dimension_numbers = #tpu.dot_dimension_numbers<[1], [0], [0], [1], [0, 0, 1, 1], [], []>} : vector<2x256xbf16>, vector<256x128xbf16>, vector<2x128xf32> -> vector<2x128xf32>
    %c0_3 = arith.constant 0 : index
    %c0_4 = arith.constant 0 : index
    %4 = vector.load %arg3[%c0_3, %c0_4] : memref<1x128xf32, #tpu.memory_space<vmem>>, vector<1x128xf32>
    %5 = vector.broadcast %4 : vector<1x128xf32> to vector<2x128xf32>
    %6 = arith.addf %3, %5 : vector<2x128xf32>
    %cst_5 = arith.constant 0.000000e+00 : f32
    %7 = vector.broadcast %cst_5 : f32 to vector<2x128xf32>
    %8 = arith.maximumf %6, %7 : vector<2x128xf32>
    %9 = arith.truncf %8 : vector<2x128xf32> to vector<2x128xbf16>
    %c0_6 = arith.constant 0 : index
    %c0_7 = arith.constant 0 : index
    %10 = vector.load %arg4[%c0_6, %c0_7] : memref<128x128xbf16, #tpu.memory_space<vmem>>, vector<128x128xbf16>
    %cst_8 = arith.constant dense<0.000000e+00> : vector<2x128xf32>
    %11 = tpu.matmul %9, %10, %cst_8 {dimension_numbers = #tpu.dot_dimension_numbers<[1], [0], [0], [1], [0, 0, 1, 1], [], []>} : vector<2x128xbf16>, vector<128x128xbf16>, vector<2x128xf32> -> vector<2x128xf32>
    %c0_9 = arith.constant 0 : index
    %c0_10 = arith.constant 0 : index
    %12 = vector.load %arg5[%c0_9, %c0_10] : memref<1x128xf32, #tpu.memory_space<vmem>>, vector<1x128xf32>
    %13 = vector.broadcast %12 : vector<1x128xf32> to vector<2x128xf32>
    %14 = arith.addf %11, %13 : vector<2x128xf32>
    %cst_11 = arith.constant 0.000000e+00 : f32
    %15 = vector.broadcast %cst_11 : f32 to vector<2x128xf32>
    %16 = arith.maximumf %14, %15 : vector<2x128xf32>
    %17 = arith.truncf %16 : vector<2x128xf32> to vector<2x128xbf16>
    %c0_12 = arith.constant 0 : index
    %c0_13 = arith.constant 0 : index
    %18 = vector.load %arg6[%c0_12, %c0_13] : memref<128x128xbf16, #tpu.memory_space<vmem>>, vector<128x128xbf16>
    %cst_14 = arith.constant dense<0.000000e+00> : vector<2x128xf32>
    %19 = tpu.matmul %17, %18, %cst_14 {dimension_numbers = #tpu.dot_dimension_numbers<[1], [0], [0], [1], [0, 0, 1, 1], [], []>} : vector<2x128xbf16>, vector<128x128xbf16>, vector<2x128xf32> -> vector<2x128xf32>
    %c0_15 = arith.constant 0 : index
    %c0_16 = arith.constant 0 : index
    %20 = vector.load %arg7[%c0_15, %c0_16] : memref<1x128xf32, #tpu.memory_space<vmem>>, vector<1x128xf32>
    %21 = vector.broadcast %20 : vector<1x128xf32> to vector<2x128xf32>
    %22 = arith.addf %19, %21 : vector<2x128xf32>
    %cst_17 = arith.constant 0.000000e+00 : f32
    %23 = vector.broadcast %cst_17 : f32 to vector<2x128xf32>
    %24 = arith.maximumf %22, %23 : vector<2x128xf32>
    %25 = arith.truncf %24 : vector<2x128xf32> to vector<2x128xbf16>
    %c0_18 = arith.constant 0 : index
    %c0_19 = arith.constant 0 : index
    %26 = vector.load %arg8[%c0_18, %c0_19] : memref<128x256xbf16, #tpu.memory_space<vmem>>, vector<128x256xbf16>
    %cst_20 = arith.constant dense<0.000000e+00> : vector<2x256xf32>
    %27 = tpu.matmul %25, %26, %cst_20 {dimension_numbers = #tpu.dot_dimension_numbers<[1], [0], [0], [1], [0, 0, 1, 1], [], []>} : vector<2x128xbf16>, vector<128x256xbf16>, vector<2x256xf32> -> vector<2x256xf32>
    %c0_21 = arith.constant 0 : index
    %c0_22 = arith.constant 0 : index
    %28 = vector.load %arg9[%c0_21, %c0_22] : memref<1x256xf32, #tpu.memory_space<vmem>>, vector<1x256xf32>
    %29 = vector.broadcast %28 : vector<1x256xf32> to vector<2x256xf32>
    %30 = arith.addf %27, %29 : vector<2x256xf32>
    %31 = arith.negf %30 : vector<2x256xf32>
    %32 = math.exp %31 : vector<2x256xf32>
    %cst_23 = arith.constant 1.000000e+00 : f32
    %33 = vector.broadcast %cst_23 : f32 to vector<2x256xf32>
    %34 = arith.addf %33, %32 : vector<2x256xf32>
    %35 = arith.divf %33, %34 : vector<2x256xf32>
    %c0_24 = arith.constant 0 : index
    %c0_25 = arith.constant 0 : index
    %36 = vector.load %arg10[%c0_24, %c0_25] : memref<2x256xf32, #tpu.memory_space<vmem>>, vector<2x256xf32>
    tpu.vector_store %arg10[%c0_24, %c0_25], %35 {strides = array<i32>} : memref<2x256xf32, #tpu.memory_space<vmem>>, vector<2x256xf32>,
    return
  }
  func.func @transform_0(%arg0: i32) -> (i32, i32) {
    %c0_i32 = arith.constant 0 : i32
    %c0_i32_0 = arith.constant 0 : i32
    return %arg0, %c0_i32 : i32, i32
  }
  func.func @transform_1(%arg0: i32) -> (i32, i32) {
    %c0_i32 = arith.constant 0 : i32
    %c0_i32_0 = arith.constant 0 : i32
    %c0_i32_1 = arith.constant 0 : i32
    return %c0_i32, %c0_i32_0 : i32, i32
  }
  func.func @transform_2(%arg0: i32) -> (i32, i32) {
    %c0_i32 = arith.constant 0 : i32
    %c0_i32_0 = arith.constant 0 : i32
    %c0_i32_1 = arith.constant 0 : i32
    return %c0_i32, %c0_i32_0 : i32, i32
  }
  func.func @transform_3(%arg0: i32) -> (i32, i32) {
    %c0_i32 = arith.constant 0 : i32
    %c0_i32_0 = arith.constant 0 : i32
    %c0_i32_1 = arith.constant 0 : i32
    return %c0_i32, %c0_i32_0 : i32, i32
  }
  func.func @transform_4(%arg0: i32) -> (i32, i32) {
    %c0_i32 = arith.constant 0 : i32
    %c0_i32_0 = arith.constant 0 : i32
    %c0_i32_1 = arith.constant 0 : i32
    return %c0_i32, %c0_i32_0 : i32, i32
  }
  func.func @transform_5(%arg0: i32) -> (i32, i32) {
    %c0_i32 = arith.constant 0 : i32
    %c0_i32_0 = arith.constant 0 : i32
    %c0_i32_1 = arith.constant 0 : i32
    return %c0_i32, %c0_i32_0 : i32, i32
  }
  func.func @transform_6(%arg0: i32) -> (i32, i32) {
    %c0_i32 = arith.constant 0 : i32
    %c0_i32_0 = arith.constant 0 : i32
    %c0_i32_1 = arith.constant 0 : i32
    return %c0_i32, %c0_i32_0 : i32, i32
  }
  func.func @transform_7(%arg0: i32) -> (i32, i32) {
    %c0_i32 = arith.constant 0 : i32
    %c0_i32_0 = arith.constant 0 : i32
    %c0_i32_1 = arith.constant 0 : i32
    return %c0_i32, %c0_i32_0 : i32, i32
  }
  func.func @transform_8(%arg0: i32) -> (i32, i32) {
    %c0_i32 = arith.constant 0 : i32
    %c0_i32_0 = arith.constant 0 : i32
    %c0_i32_1 = arith.constant 0 : i32
    return %c0_i32, %c0_i32_0 : i32, i32
  }
  func.func @transform_9(%arg0: i32) -> (i32, i32) {
    %c0_i32 = arith.constant 0 : i32
    %c0_i32_0 = arith.constant 0 : i32
    return %arg0, %c0_i32 : i32, i32
  }
}

</mosaic_0001>

<bundles_post_ra>
// kernel: tpu_custom_call.1
= control target key start
LH: loop header
LB: loop body
LE: loop exit
PB: predicated region body
PF: predicated region fallthrough
CT: control target
= control target key end

     0   :  { %14 = vsyncpa [#allocation3], 0  ;;  %s1233_s0 = inlined_call_operand.hbm [shape: f32[2,256], index: 0, kind: input, shape index: {}]   ;;  %s1234_s1 = inlined_call_operand.hbm [shape: bf16[256,128], index: 1, kind: input, shape index: {}]   ;;  %s1235_s2 = inlined_call_operand.vmem [shape: f32[1,128], index: 2, kind: input, shape index: {}]   ;;  %s1236_s3 = inlined_call_operand.hbm [shape: bf16[128,128], index: 3, kind: input, shape index: {}]   ;;  %s1237_s4 = inlined_call_operand.vmem [shape: f32[1,128], index: 4, kind: input, shape index: {}]   ;;  %s1238_s5 = inlined_call_operand.hbm [shape: bf16[128,128], index: 5, kind: input, shape index: {}]   ;;  %s1239_s6 = inlined_call_operand.vmem [shape: f32[1,128], index: 6, kind: input, shape index: {}]   ;;  %s1240_s7 = inlined_call_operand.hbm [shape: bf16[128,256], index: 7, kind: input, shape index: {}]   ;;  %s1241_s8 = inlined_call_operand.vmem [shape: f32[1,256], index: 8, kind: input, shape index: {}]   ;;  %s1242_s9 = inlined_call_operand.hbm [shape: f32[2,256], index: 9, kind: output, shape index: {}]  }
   0x1   :  { %15 = vsyncpa [#allocation6], 0 }
   0x2   :  { %16 = vsyncpa [#allocation9], 0 }
   0x3   :  { %17 = vsyncpa [#allocation4], 0  ;;  %s1059_s30 = smov [#allocation5]   ;;  %s919_s13 = scalar_lea.hbm %s1234_s1, 2048 }
   0x4   :  { %s33_s10 = sshll.u32 %s1059_s30, 4  ;;  %p920_p0 = scmp.ne.s32.totalorder %s1234_s1, %s919_s13  ;;  %s34_s10 = int_to_ptr.vmem [resolvable:$true] %s33_s10 }
   0x5   :  { %p923_p1 = scmp.lt.u32.totalorder %s919_s13, %s1234_s1 }
   0x7   :  { %p925_p2 = pnand %p923_p1, %p920_p0 }
   0x9   :  { %928 = shalt.err (!%p925_p2)
}
   0xa   :  { %s929_s18 = scalar_lea.vmem %s34_s10, 2048  ;;  %p934_p4 = scmp.lt.s32.totalorder %s34_s10, %s34_s10 }
   0xb   :  { %p930_p3 = scmp.ne.s32.totalorder %s34_s10, %s929_s18  ;;  %p935_p5 = scmp.lt.s32.totalorder %s929_s18, %s929_s18 }
   0xd   :  { %p936_p6 = por %p935_p5, %p934_p4 }
   0xf   :  { %p937_p7 = pnand %p936_p6, %p930_p3 }
  0x11   :  { %940 = shalt.err (!%p937_p7)
}
  0x12   :  { %s1060_s19 = smov 64   ;;  %s1061_s20 = smov 4  }
  0x13   :  { %39 = dma.hbm_to_vmem [thread:$0]  %s1234_s1, 2048, %s34_s10, [#allocation6], %s1060_s19, %s1060_s19, %s1061_s20  }
  0x14   :  { %s1062_s23 = smov [#allocation8]   ;;  %s1063_s25 = smov [#allocation2]  }
  0x15   :  { %s61_s24 = sshll.u32 %s1062_s23, 4  ;;  %s24_s26 = sshll.u32 %s1063_s25, 4  ;;  %s62_s24 = int_to_ptr.vmem [resolvable:$true] %s61_s24  ;;  %s25_s26 = int_to_ptr.vmem [resolvable:$true] %s24_s26 }
  0x16   :  { %s941_s29 = scalar_lea.hbm %s1238_s5, 1024 }
  0x17   :  { %p942_p8 = scmp.ne.s32.totalorder %s1238_s5, %s941_s29  ;;  %p945_p9 = scmp.lt.u32.totalorder %s941_s29, %s1238_s5 }
  0x19   :  { %p947_p10 = pnand %p945_p9, %p942_p8 }
  0x1b   :  { %950 = shalt.err (!%p947_p10)
}
  0x1c   :  { %s951_s1 = scalar_lea.vmem %s62_s24, 1024  ;;  %p956_p12 = scmp.lt.s32.totalorder %s62_s24, %s62_s24 }
  0x1d   :  { %p952_p11 = scmp.ne.s32.totalorder %s62_s24, %s951_s1  ;;  %p957_p13 = scmp.lt.s32.totalorder %s951_s1, %s951_s1 }
  0x1f   :  { %p958_p0 = por %p957_p13, %p956_p12 }
  0x21   :  { %p959_p1 = pnand %p958_p0, %p952_p11 }
  0x23   :  { %962 = shalt.err (!%p959_p1)
}
  0x24   :  { %67 = dma.hbm_to_vmem [thread:$0]  %s1238_s5, 1024, %s62_s24, [#allocation9], %s1060_s19, %s1060_s19, %s1061_s20  }
  0x25   :  { %s963_s17 = scalar_lea.hbm %s1233_s0, 64 }
  0x26   :  { %p964_p2 = scmp.ne.s32.totalorder %s1233_s0, %s963_s17  ;;  %p967_p3 = scmp.lt.u32.totalorder %s963_s17, %s1233_s0 }
  0x28   :  { %p969_p4 = pnand %p967_p3, %p964_p2 }
  0x2a   :  { %972 = shalt.err (!%p969_p4)
}
  0x2b   :  { %s973_s25 = scalar_lea.vmem %s25_s26, 64  ;;  %p978_p6 = scmp.lt.s32.totalorder %s25_s26, %s25_s26 }
  0x2c   :  { %p974_p5 = scmp.ne.s32.totalorder %s25_s26, %s973_s25  ;;  %p979_p7 = scmp.lt.s32.totalorder %s973_s25, %s973_s25 }
  0x2e   :  { %p980_p8 = por %p979_p7, %p978_p6 }
  0x30   :  { %p981_p9 = pnand %p980_p8, %p974_p5 }
  0x32   :  { %984 = shalt.err (!%p981_p9)
}
  0x33   :  { %27 = dma.hbm_to_vmem [thread:$0]  %s1233_s0, 64, %s25_s26, [#allocation3]  }
  0x34   :  { %s1064_s27 = smov [#allocation7]   ;;  %s1065_s29 = smov [#allocation10]  }
  0x35   :  { %s47_s28 = sshll.u32 %s1064_s27, 4  ;;  %s75_s30 = sshll.u32 %s1065_s29, 4  ;;  %s48_s28 = int_to_ptr.vmem [resolvable:$true] %s47_s28  ;;  %s76_s30 = int_to_ptr.vmem [resolvable:$true] %s75_s30 }
  0x36   :  { %s985_s13 = scalar_lea.hbm %s1236_s3, 1024 }
  0x37   :  { %p986_p10 = scmp.ne.s32.totalorder %s1236_s3, %s985_s13  ;;  %p989_p11 = scmp.lt.u32.totalorder %s985_s13, %s1236_s3 }
  0x39   :  { %p991_p12 = pnand %p989_p11, %p986_p10 }
  0x3b   :  { %994 = shalt.err (!%p991_p12)
}
  0x3c   :  { %s995_s0 = scalar_lea.vmem %s48_s28, 1024  ;;  %p1000_p0 = scmp.lt.s32.totalorder %s48_s28, %s48_s28 }
  0x3d   :  { %p996_p13 = scmp.ne.s32.totalorder %s48_s28, %s995_s0  ;;  %p1001_p1 = scmp.lt.s32.totalorder %s995_s0, %s995_s0 }
  0x3f   :  { %p1002_p2 = por %p1001_p1, %p1000_p0 }
  0x41   :  { %p1003_p3 = pnand %p1002_p2, %p996_p13 }
  0x43   :  { %1006 = shalt.err (!%p1003_p3)
}
  0x44   :  { %53 = dma.hbm_to_vmem [thread:$0]  %s1236_s3, 1024, %s48_s28, [#allocation6], %s1060_s19, %s1060_s19, %s1061_s20  }
  0x45   :  { %s1007_s21 = scalar_lea.hbm %s1240_s7, 2048 }
  0x46   :  { %p1008_p4 = scmp.ne.s32.totalorder %s1240_s7, %s1007_s21  ;;  %p1011_p5 = scmp.lt.u32.totalorder %s1007_s21, %s1240_s7 }
  0x48   :  { %p1013_p6 = pnand %p1011_p5, %p1008_p4 }
  0x4a   :  { %1016 = shalt.err (!%p1013_p6)
}
  0x4b   :  { %s1017_s24 = scalar_lea.vmem %s76_s30, 2048  ;;  %p1022_p8 = scmp.lt.s32.totalorder %s76_s30, %s76_s30 }
  0x4c   :  { %p1018_p7 = scmp.ne.s32.totalorder %s76_s30, %s1017_s24  ;;  %p1023_p9 = scmp.lt.s32.totalorder %s1017_s24, %s1017_s24 }
  0x4e   :  { %p1024_p10 = por %p1023_p9, %p1022_p8 }
  0x50   :  { %p1025_p11 = pnand %p1024_p10, %p1018_p7 }
  0x52   :  { %1028 = shalt.err (!%p1025_p11)
}
  0x53   :  { %s1066_s3 = smov 128   ;;  %s1067_s19 = smov 8  }
  0x54   :  { %81 = dma.hbm_to_vmem [thread:$0]  %s1240_s7, 2048, %s76_s30, [#allocation9], %s1066_s3, %s1066_s3, %s1067_s19  }
  0x55   :  { %1051 = dma.done.wait [#allocation3], 64  }
  0x56   :  { %1052 = vsyncadd [#allocation3], 4294967232 }
  0x57   :  { %1053 = dma.done.wait [#allocation6], 3072  }
  0x58   :  { %1054 = vsyncadd [#allocation6], 4294964224 }
  0x59   :  { %1055 = dma.done.wait [#allocation9], 3072  }
  0x5a   :  { %1056 = vsyncadd [#allocation9], 4294964224  ;;  %v1068_v0 = vmov 0.0   ;;  %v855_v1 = vld [vmem:[#allocation5 + $0x40] sm:$0xff]   ;;  %v857_v3 = vld [vmem:[#allocation5 + $0x48] sm:$0xff]   ;;  %vm1069_vm0 = vmmov 0  }
  0x5b   :  { %802 = vmatprep.subr.bf16.mxu1 %v1068_v0  ;;  %v856_v2 = vld [vmem:[#allocation5] sm:$0xff]   ;;  %762 = vmatprep.subr.bf16.mxu0 %v855_v1  ;;  %v858_v4 = vld [vmem:[#allocation5 + $0x8] sm:$0xff]   ;;  %v859_v5 = vld [vmem:[#allocation5 + $0x50] sm:$0xff]  }
  0x5c   :  { %763 = vmatpush3.bf16.msra.mxu0 %v856_v2  ;;  %v860_v6 = vld [vmem:[#allocation5 + $0x10] sm:$0xff]   ;;  %v861_v7 = vld [vmem:[#allocation5 + $0x58] sm:$0xff]   ;;  %v863_v9 = vld [vmem:[#allocation5 + $0x60] sm:$0xff]   ;;  %818 = vmatprep.mubr.msk.bf16.mxu1 %vm1069_vm0, %v1068_v0 }
  0x5d   :  { %764 = vmatprep.subr.bf16.mxu0 %v857_v3  ;;  %v862_v8 = vld [vmem:[#allocation5 + $0x18] sm:$0xff]   ;;  %v864_v10 = vld [vmem:[#allocation5 + $0x20] sm:$0xff]   ;;  %v865_v11 = vld [vmem:[#allocation5 + $0x68] sm:$0xff]  }
  0x5e   :  { %v707_v12 = vld.sshfl [vmem:[#allocation2] sm:$0x33 pattern:$0x76325410]  ;;  %v871_v14 = vld [vmem:[#allocation7] sm:$0xff]   ;;  %v866_v15 = vld [vmem:[#allocation5 + $0x28] sm:$0xff]  }
  0x5f   :  { %v109_v13 = vcombine.high %v707_v12, %v707_v12  ;;  %803 = vmatpush3.bf16.msra.mxu1 %v871_v14  ;;  %v872_v17 = vld [vmem:[#allocation7 + $0x8] sm:$0xff]   ;;  %v867_v18 = vld [vmem:[#allocation5 + $0x70] sm:$0xff]   ;;  %v869_v20 = vld [vmem:[#allocation5 + $0x78] sm:$0xff]   ;;  %v112_v25 = vpack.c.bf16 %v707_v12, %v707_v12 }
  0x60   :  { %765 = vmatpush3.bf16.msra.mxu0 %v858_v4  ;;  %804 = vmatprep.subr.bf16.mxu1 %v1068_v0  ;;  %v868_v19 = vld [vmem:[#allocation5 + $0x30] sm:$0xff]   ;;  %v870_v22 = vld [vmem:[#allocation5 + $0x38] sm:$0xff]   ;;  %v875_v24 = vld [vmem:[#allocation7 + $0x20] sm:$0xff]  }
  0x61   :  { %766 = vmatprep.subr.bf16.mxu0 %v859_v5  ;;  %v113_v16 = vpack.c.bf16 %v109_v13, %v109_v13  ;;  %v873_v21 = vld [vmem:[#allocation7 + $0x10] sm:$0xff]   ;;  %v874_v23 = vld [vmem:[#allocation7 + $0x18] sm:$0xff]   ;;  %v876_v26 = vld [vmem:[#allocation7 + $0x28] sm:$0xff]  }
  0x62   :  { %v877_v27 = vld [vmem:[#allocation7 + $0x30] sm:$0xff]   ;;  %v878_v28 = vld [vmem:[#allocation7 + $0x38] sm:$0xff]   ;;  %v879_v29 = vld [vmem:[#allocation8] sm:$0xff]  }
  0x63   :  { %281 = vmatprep.mubr.bf16.mxu0 %v113_v16  ;;  %805 = vmatpush3.bf16.msra.mxu1 %v872_v17  ;;  %v880_v30 = vld [vmem:[#allocation8 + $0x8] sm:$0xff]   ;;  %v881_v31 = vld [vmem:[#allocation8 + $0x10] sm:$0xff]   ;;  %v882_v32 = vld [vmem:[#allocation8 + $0x18] sm:$0xff]  }
  0x64   :  { %767 = vmatpush3.bf16.msra.mxu0 %v860_v6  ;;  %806 = vmatprep.subr.bf16.mxu1 %v1068_v0  ;;  %v883_v33 = vld [vmem:[#allocation8 + $0x20] sm:$0xff]   ;;  %v884_v34 = vld [vmem:[#allocation8 + $0x28] sm:$0xff]   ;;  %v708_v36 = vld [vmem:[%s1235_s2] ss:$0 sm:$0xff]  ;;  %v1070_v6 = vmov 0  }
  0x65   :  { %768 = vmatprep.subr.bf16.mxu0 %v861_v7  ;;  %v885_v44 = vld [vmem:[#allocation8 + $0x30] sm:$0xff]   ;;  %v886_v45 = vld [vmem:[#allocation8 + $0x38] sm:$0xff]   ;;  %v887_v46 = vld [vmem:[#allocation10] ss:$8 sps:$4 sm:$0xff]  }
  0x66   :  { %v889_v47 = vld [vmem:[#allocation10 + $0x4] ss:$8 sps:$4 sm:$0xff]   ;;  %v892_v48 = vld [vmem:[#allocation10 + $0x14] ss:$8 sps:$4 sm:$0xff]   ;;  %v890_v49 = vld [vmem:[#allocation10 + $0x10] ss:$8 sps:$4 sm:$0xff]  }
  0x67   :  { %807 = vmatpush3.bf16.msra.mxu1 %v873_v21  ;;  %v895_v50 = vld [vmem:[#allocation10 + $0x24] ss:$8 sps:$4 sm:$0xff]   ;;  %v893_v51 = vld [vmem:[#allocation10 + $0x20] ss:$8 sps:$4 sm:$0xff]   ;;  %v898_v52 = vld [vmem:[#allocation10 + $0x34] ss:$8 sps:$4 sm:$0xff]  }
  0x68   :  { %769 = vmatpush3.bf16.msra.mxu0 %v862_v8  ;;  %808 = vmatprep.subr.bf16.mxu1 %v1068_v0  ;;  %v896_v53 = vld [vmem:[#allocation10 + $0x30] ss:$8 sps:$4 sm:$0xff]   ;;  %v901_v54 = vld [vmem:[#allocation10 + $0x44] ss:$8 sps:$4 sm:$0xff]   ;;  %v899_v55 = vld [vmem:[#allocation10 + $0x40] ss:$8 sps:$4 sm:$0xff]  }
  0x69   :  { %770 = vmatprep.subr.bf16.mxu0 %v863_v9  ;;  %v904_v56 = vld [vmem:[#allocation10 + $0x54] ss:$8 sps:$4 sm:$0xff]   ;;  %v902_v57 = vld [vmem:[#allocation10 + $0x50] ss:$8 sps:$4 sm:$0xff]   ;;  %v907_v58 = vld [vmem:[#allocation10 + $0x64] ss:$8 sps:$4 sm:$0xff]  }
  0x6a   :  { %v905_v59 = vld [vmem:[#allocation10 + $0x60] ss:$8 sps:$4 sm:$0xff]   ;;  %v725_v60 = vld [vmem:[%s1237_s4] ss:$0 sm:$0xff]  ;;  %v908_v5 = vld [vmem:[#allocation10 + $0x70] ss:$8 sps:$4 sm:$0xff]  }
  0x6b   :  { %809 = vmatpush3.bf16.msra.mxu1 %v874_v23  ;;  %v910_v4 = vld [vmem:[#allocation10 + $0x74] ss:$8 sps:$4 sm:$0xff]  }
  0x6c   :  { %771 = vmatpush3.bf16.msra.mxu0 %v864_v10  ;;  %810 = vmatprep.subr.bf16.mxu1 %v1068_v0  ;;  %v734_v7 = vld [vmem:[%s1239_s6] ss:$0 sm:$0xff]  ;;  %s1071_s6 = smov [#allocation11]  }
  0x6d   :  { %772 = vmatprep.subr.bf16.mxu0 %v865_v11 }
  0x6f   :  { %811 = vmatpush3.bf16.msra.mxu1 %v875_v24 }
  0x70   :  { %773 = vmatpush3.bf16.msra.mxu0 %v866_v15  ;;  %812 = vmatprep.subr.bf16.mxu1 %v1068_v0  ;;  %v535_v15 = vlaneseq }
  0x71   :  { %774 = vmatprep.subr.bf16.mxu0 %v867_v18  ;;  %v533_v18 = vld [vmem:[%s1241_s8] sm:$0x3]  ;;  %s696_s8 = sshll.u32 %s1071_s6, 4  ;;  %s697_s8 = int_to_ptr.vmem [resolvable:$true] %s696_s8 }
  0x72   :  { %v536_v16 = vshrl.u32 %v535_v15, 7  ;;  %s1029_s13 = scalar_lea.vmem %s697_s8, 64  ;;  %p1034_p13 = scmp.lt.s32.totalorder %s697_s8, %s697_s8 }
  0x73   :  { %813 = vmatpush3.bf16.msra.mxu1 %v876_v26  ;;  %p1030_p12 = scmp.ne.s32.totalorder %s697_s8, %s1029_s13  ;;  %p1035_p0 = scmp.lt.s32.totalorder %s1029_s13, %s1029_s13 }
  0x74   :  { %775 = vmatpush3.bf16.msra.mxu0 %v868_v19  ;;  %814 = vmatprep.subr.bf16.mxu1 %v1068_v0  ;;  %v537_v17 = vsub.s32 0, %v536_v16  ;;  %v541_v19 = vsub.s32 1, %v536_v16 }
  0x75   :  { %776 = vmatprep.subr.bf16.mxu0 %v869_v20  ;;  %p1036_p1 = por %p1035_p0, %p1034_p13 }
  0x76   :  { %v538_v20 = vrot.slane %v533_v18, %v537_v17  ;;  %v542_v21 = vrot.slane %v533_v18, %v541_v19 }
  0x77   :  { %815 = vmatpush3.bf16.msra.mxu1 %v877_v27  ;;  %p1037_p2 = pnand %p1036_p1, %p1030_p12 }
  0x78   :  { %777 = vmatpush3.bf16.msra.mxu0 %v870_v22  ;;  %816 = vmatprep.subr.bf16.mxu1 %v1068_v0 }
  0x79   :  { %822 = vmatprep.subr.bf16.mxu0 %v1068_v0 }
  0x7b   :  { %282 = vmatmul.mubr.bf16.vlgmr.msra.gmra.mrb[0].mxu0 %v112_v25  ;;  %817 = vmatpush3.bf16.msra.mxu1 %v878_v28 }
  0x7c   :  { %838 = vmatprep.mubr.msk.bf16.mxu0 %vm1069_vm0, %v1068_v0  ;;  %823 = vmatpush3.bf16.msra.mxu0 %v879_v29 }
  0x7d   :  { %824 = vmatprep.subr.bf16.mxu0 %v1068_v0  ;;  %625 = vmatprep.subr.bf16.mxu1 %v889_v47 }
  0x80   :  { %825 = vmatpush3.bf16.msra.mxu0 %v880_v30 }
  0x81   :  { %826 = vmatprep.subr.bf16.mxu0 %v1068_v0 }
  0x84   :  { %827 = vmatpush3.bf16.msra.mxu0 %v881_v31 }
  0x85   :  { %828 = vmatprep.subr.bf16.mxu0 %v1068_v0 }
  0x88   :  { %829 = vmatpush3.bf16.msra.mxu0 %v882_v32 }
  0x89   :  { %830 = vmatprep.subr.bf16.mxu0 %v1068_v0 }
  0x8c   :  { %831 = vmatpush3.bf16.msra.mxu0 %v883_v33 }
  0x8d   :  { %832 = vmatprep.subr.bf16.mxu0 %v1068_v0 }
  0x90   :  { %833 = vmatpush3.bf16.msra.mxu0 %v884_v34 }
  0x91   :  { %834 = vmatprep.subr.bf16.mxu0 %v1068_v0 }
  0x94   :  { %835 = vmatpush3.bf16.msra.mxu0 %v885_v44 }
  0x95   :  { %836 = vmatprep.subr.bf16.mxu0 %v1068_v0 }
  0x98   :  { %837 = vmatpush3.bf16.msra.mxu0 %v886_v45 }
 0x14e   :  { %v778_v35 = vpop.f32.mrb[0].mxu0 }
 0x14f   :  { %v779_v37 = vpop.f32.mrb[1].mxu0 }
 0x150   :  { %v780_v38 = vadd.f32 %v779_v37, %v778_v35  ;;  %v781_v39 = vpop.f32.mrb[2].mxu0 }
 0x151   :  { %v782_v40 = vpop.f32.mrb[3].mxu0 }
 0x152   :  { %v284_v41 = vadd.f32 %v780_v38, %v708_v36 }
 0x154   :  { %v289_v42 = vmax.f32 %v284_v41, 0.0 }
 0x156   :  { %v290_v43 = vpack.c.bf16 %v289_v42, %v289_v42 }
 0x158   :  { %819 = vmatmul.mubr.bf16.vlgmr.msra.gmra.mrb[0].mxu1 %v290_v43 }
 0x159   :  { %626 = vmatpush1.bf16.msra.mxu1 %v887_v46  ;;  %657 = vmatprep.mubr.bf16.mxu1 %v1070_v6 }
 0x15a   :  { %627 = vmatprep.subr.bf16.mxu1 %v892_v48 }
 0x15d   :  { %628 = vmatpush1.bf16.msra.mxu1 %v890_v49 }
 0x15e   :  { %629 = vmatprep.subr.bf16.mxu1 %v895_v50 }
 0x161   :  { %630 = vmatpush1.bf16.msra.mxu1 %v893_v51 }
 0x162   :  { %631 = vmatprep.subr.bf16.mxu1 %v898_v52 }
 0x165   :  { %632 = vmatpush1.bf16.msra.mxu1 %v896_v53 }
 0x166   :  { %633 = vmatprep.subr.bf16.mxu1 %v901_v54 }
 0x169   :  { %634 = vmatpush1.bf16.msra.mxu1 %v899_v55 }
 0x16a   :  { %635 = vmatprep.subr.bf16.mxu1 %v904_v56 }
 0x16d   :  { %636 = vmatpush1.bf16.msra.mxu1 %v902_v57 }
 0x16e   :  { %637 = vmatprep.subr.bf16.mxu1 %v907_v58 }
 0x171   :  { %638 = vmatpush1.bf16.msra.mxu1 %v905_v59 }
 0x172   :  { %639 = vmatprep.subr.bf16.mxu1 %v910_v4 }
 0x175   :  { %640 = vmatpush1.bf16.msra.mxu1 %v908_v5 }
 0x22b   :  { %v396_v61 = vpop.f32.mrb[0].mxu1 }
 0x22c   :  { %v397_v62 = vadd.f32 %v725_v60, %v396_v61  ;;  %v820_v63 = vpop.f32.mrb[1].mxu1 }
 0x22d   :  { %v399_v0 = vpop.f32.mrb[2].mxu1 }
 0x22e   :  { %v402_v1 = vmax.f32 %v397_v62, 0.0  ;;  %v821_v2 = vpop.f32.mrb[3].mxu1 }
 0x230   :  { %v403_v3 = vpack.c.bf16 %v402_v1, %v402_v1 }
 0x232   :  { %839 = vmatmul.mubr.bf16.vlgmr.msra.gmra.mrb[4].mxu0 %v403_v3 }
 0x305   :  { %v509_v8 = vpop.f32.mrb[4].mxu0 }
 0x306   :  { %v510_v9 = vadd.f32 %v734_v7, %v509_v8  ;;  %v840_v10 = vpop.f32.mrb[5].mxu0 }
 0x307   :  { %v512_v11 = vpop.f32.mrb[6].mxu0 }
 0x308   :  { %v515_v12 = vmax.f32 %v510_v9, 0.0  ;;  %v841_v13 = vpop.f32.mrb[7].mxu0 }
 0x30a   :  { %v516_v14 = vpack.c.bf16 %v515_v12, %v515_v12 }
 0x30c   :  { %658 = vmatmul.mubr.bf16.vlgmr.msra.gmra.mrb[4].mxu1 %v516_v14 }
 0x3df   :  { %v659_v22 = vpop.f32.mrb[4].mxu1 }
 0x3e0   :  { %v660_v23 = vadd.f32 %v659_v22, %v538_v20  ;;  %v661_v24 = vpop.f32.mrb[5].mxu1 }
 0x3e1   :  { %v662_v25 = vadd.f32 %v661_v24, %v542_v21  ;;  %v663_v26 = vpop.f32.mrb[6].mxu1 }
 0x3e2   :  { %v759_v27 = vmul.f32 -1.442695, %v660_v23  ;;  %v664_v28 = vpop.f32.mrb[7].mxu1 }
 0x3e3   :  { %v760_v29 = vmul.f32 -1.442695, %v662_v25 }
 0x3e4   :  { %911 = vpow2.f32 %v759_v27 }
 0x3e5   :  { %913 = vpow2.f32 %v760_v29 }
 0x3ee   :  { %v912_v30 = vpop.eup %911 }
 0x3ef   :  { %v914_v31 = vpop.eup %913  ;;  %v672_v32 = vadd.f32 1.0, %v912_v30 }
 0x3f0   :  { %v673_v33 = vadd.f32 1.0, %v914_v31 }
 0x3f1   :  { %915 = vrcp.f32 %v672_v32 }
 0x3f2   :  { %917 = vrcp.f32 %v673_v33 }
 0x3fb   :  { %v916_v34 = vpop.eup %915 }
 0x3fc   :  { %v918_v35 = vpop.eup %917 }
 0x3fd   :  { %v680_v36 = vcombine.low %v916_v34, %v918_v35 }
 0x3ff   :  { %761 = vst.sshfl [vmem:[#allocation11] sm:$0x33 pattern:$0x76325410] %v680_v36 }
 0x400   :  { %1040 = shalt.err (!%p1037_p2)
}
 0x401   :  { %s1041_s14 = scalar_lea.hbm %s1242_s9, 64 }
 0x402   :  { %p1042_p3 = scmp.ne.s32.totalorder %s1242_s9, %s1041_s14  ;;  %p1045_p4 = scmp.lt.u32.totalorder %s1041_s14, %s1242_s9 }
 0x404   :  { %p1047_p5 = pnand %p1045_p4, %p1042_p3 }
 0x406   :  { %1050 = shalt.err (!%p1047_p5)
}
 0x407   :  { %699 = dma.vmem_to_hbm [thread:$0]  %s697_s8, 64, %s1242_s9, [#allocation4]  }
 0x408   :  { %1057 = dma.done.wait [#allocation4], 64  }
 0x409   :  { %1058 = vsyncadd [#allocation4], 4294967232 }
 0x40a   :  { %703 = vsyncpa [#allocation3], 1 }
 0x40b   :  { %704 = vsyncpa [#allocation6], 1 }
 0x40c   :  { %705 = vsyncpa [#allocation9], 1 }
 0x40d   :  { %706 = vsyncpa [#allocation4], 1 }

// kernel: tpu_custom_call.1
= control target key start
LH: loop header
LB: loop body
LE: loop exit
PB: predicated region body
PF: predicated region fallthrough
CT: control target
= control target key end

     0   :  { %14 = vsyncpa [#allocation3], 0  ;;  %s1233_s0 = inlined_call_operand.hbm [shape: f32[2,256], index: 0, kind: input, shape index: {}]   ;;  %s1234_s1 = inlined_call_operand.hbm [shape: bf16[256,128], index: 1, kind: input, shape index: {}]   ;;  %s1235_s2 = inlined_call_operand.vmem [shape: f32[1,128], index: 2, kind: input, shape index: {}]   ;;  %s1236_s3 = inlined_call_operand.hbm [shape: bf16[128,128], index: 3, kind: input, shape index: {}]   ;;  %s1237_s4 = inlined_call_operand.vmem [shape: f32[1,128], index: 4, kind: input, shape index: {}]   ;;  %s1238_s5 = inlined_call_operand.hbm [shape: bf16[128,128], index: 5, kind: input, shape index: {}]   ;;  %s1239_s6 = inlined_call_operand.vmem [shape: f32[1,128], index: 6, kind: input, shape index: {}]   ;;  %s1240_s7 = inlined_call_operand.hbm [shape: bf16[128,256], index: 7, kind: input, shape index: {}]   ;;  %s1241_s8 = inlined_call_operand.vmem [shape: f32[1,256], index: 8, kind: input, shape index: {}]   ;;  %s1242_s9 = inlined_call_operand.hbm [shape: f32[2,256], index: 9, kind: output, shape index: {}]  }
   0x1   :  { %15 = vsyncpa [#allocation6], 0 }
   0x2   :  { %16 = vsyncpa [#allocation9], 0 }
   0x3   :  { %17 = vsyncpa [#allocation4], 0  ;;  %s1059_s30 = smov [#allocation5]   ;;  %s919_s13 = scalar_lea.hbm %s1234_s1, 2048 }
   0x4   :  { %s33_s10 = sshll.u32 %s1059_s30, 4  ;;  %p920_p0 = scmp.ne.s32.totalorder %s1234_s1, %s919_s13  ;;  %s34_s10 = int_to_ptr.vmem [resolvable:$true] %s33_s10 }
   0x5   :  { %p923_p1 = scmp.lt.u32.totalorder %s919_s13, %s1234_s1 }
   0x7   :  { %p925_p2 = pnand %p923_p1, %p920_p0 }
   0x9   :  { %928 = shalt.err (!%p925_p2)
}
   0xa   :  { %s929_s18 = scalar_lea.vmem %s34_s10, 2048  ;;  %p934_p4 = scmp.lt.s32.totalorder %s34_s10, %s34_s10 }
   0xb   :  { %p930_p3 = scmp.ne.s32.totalorder %s34_s10, %s929_s18  ;;  %p935_p5 = scmp.lt.s32.totalorder %s929_s18, %s929_s18 }
   0xd   :  { %p936_p6 = por %p935_p5, %p934_p4 }
   0xf   :  { %p937_p7 = pnand %p936_p6, %p930_p3 }
  0x11   :  { %940 = shalt.err (!%p937_p7)
}
  0x12   :  { %s1060_s19 = smov 64   ;;  %s1061_s20 = smov 4  }
  0x13   :  { %39 = dma.hbm_to_vmem [thread:$0]  %s1234_s1, 2048, %s34_s10, [#allocation6], %s1060_s19, %s1060_s19, %s1061_s20  }
  0x14   :  { %s1062_s23 = smov [#allocation8]   ;;  %s1063_s25 = smov [#allocation2]  }
  0x15   :  { %s61_s24 = sshll.u32 %s1062_s23, 4  ;;  %s24_s26 = sshll.u32 %s1063_s25, 4  ;;  %s62_s24 = int_to_ptr.vmem [resolvable:$true] %s61_s24  ;;  %s25_s26 = int_to_ptr.vmem [resolvable:$true] %s24_s26 }
  0x16   :  { %s941_s29 = scalar_lea.hbm %s1238_s5, 1024 }
  0x17   :  { %p942_p8 = scmp.ne.s32.totalorder %s1238_s5, %s941_s29  ;;  %p945_p9 = scmp.lt.u32.totalorder %s941_s29, %s1238_s5 }
  0x19   :  { %p947_p10 = pnand %p945_p9, %p942_p8 }
  0x1b   :  { %950 = shalt.err (!%p947_p10)
}
  0x1c   :  { %s951_s1 = scalar_lea.vmem %s62_s24, 1024  ;;  %p956_p12 = scmp.lt.s32.totalorder %s62_s24, %s62_s24 }
  0x1d   :  { %p952_p11 = scmp.ne.s32.totalorder %s62_s24, %s951_s1  ;;  %p957_p13 = scmp.lt.s32.totalorder %s951_s1, %s951_s1 }
  0x1f   :  { %p958_p0 = por %p957_p13, %p956_p12 }
  0x21   :  { %p959_p1 = pnand %p958_p0, %p952_p11 }
  0x23   :  { %962 = shalt.err (!%p959_p1)
}
  0x24   :  { %67 = dma.hbm_to_vmem [thread:$0]  %s1238_s5, 1024, %s62_s24, [#allocation9], %s1060_s19, %s1060_s19, %s1061_s20  }
  0x25   :  { %s963_s17 = scalar_lea.hbm %s1233_s0, 64 }
  0x26   :  { %p964_p2 = scmp.ne.s32.totalorder %s1233_s0, %s963_s17  ;;  %p967_p3 = scmp.lt.u32.totalorder %s963_s17, %s1233_s0 }
  0x28   :  { %p969_p4 = pnand %p967_p3, %p964_p2 }
  0x2a   :  { %972 = shalt.err (!%p969_p4)
}
  0x2b   :  { %s973_s25 = scalar_lea.vmem %s25_s26, 64  ;;  %p978_p6 = scmp.lt.s32.totalorder %s25_s26, %s25_s26 }
  0x2c   :  { %p974_p5 = scmp.ne.s32.totalorder %s25_s26, %s973_s25  ;;  %p979_p7 = scmp.lt.s32.totalorder %s973_s25, %s973_s25 }
  0x2e   :  { %p980_p8 = por %p979_p7, %p978_p6 }
  0x30   :  { %p981_p9 = pnand %p980_p8, %p974_p5 }
  0x32   :  { %984 = shalt.err (!%p981_p9)
}
  0x33   :  { %27 = dma.hbm_to_vmem [thread:$0]  %s1233_s0, 64, %s25_s26, [#allocation3]  }
  0x34   :  { %s1064_s27 = smov [#allocation7]   ;;  %s1065_s29 = smov [#allocation10]  }
  0x35   :  { %s47_s28 = sshll.u32 %s1064_s27, 4  ;;  %s75_s30 = sshll.u32 %s1065_s29, 4  ;;  %s48_s28 = int_to_ptr.vmem [resolvable:$true] %s47_s28  ;;  %s76_s30 = int_to_ptr.vmem [resolvable:$true] %s75_s30 }
  0x36   :  { %s985_s13 = scalar_lea.hbm %s1236_s3, 1024 }
  0x37   :  { %p986_p10 = scmp.ne.s32.totalorder %s1236_s3, %s985_s13  ;;  %p989_p11 = scmp.lt.u32.totalorder %s985_s13, %s1236_s3 }
  0x39   :  { %p991_p12 = pnand %p989_p11, %p986_p10 }
  0x3b   :  { %994 = shalt.err (!%p991_p12)
}
  0x3c   :  { %s995_s0 = scalar_lea.vmem %s48_s28, 1024  ;;  %p1000_p0 = scmp.lt.s32.totalorder %s48_s28, %s48_s28 }
  0x3d   :  { %p996_p13 = scmp.ne.s32.totalorder %s48_s28, %s995_s0  ;;  %p1001_p1 = scmp.lt.s32.totalorder %s995_s0, %s995_s0 }
  0x3f   :  { %p1002_p2 = por %p1001_p1, %p1000_p0 }
  0x41   :  { %p1003_p3 = pnand %p1002_p2, %p996_p13 }
  0x43   :  { %1006 = shalt.err (!%p1003_p3)
}
  0x44   :  { %53 = dma.hbm_to_vmem [thread:$0]  %s1236_s3, 1024, %s48_s28, [#allocation6], %s1060_s19, %s1060_s19, %s1061_s20  }
  0x45   :  { %s1007_s21 = scalar_lea.hbm %s1240_s7, 2048 }
  0x46   :  { %p1008_p4 = scmp.ne.s32.totalorder %s1240_s7, %s1007_s21  ;;  %p1011_p5 = scmp.lt.u32.totalorder %s1007_s21, %s1240_s7 }
  0x48   :  { %p1013_p6 = pnand %p1011_p5, %p1008_p4 }
  0x4a   :  { %1016 = shalt.err (!%p1013_p6)
}
  0x4b   :  { %s1017_s24 = scalar_lea.vmem %s76_s30, 2048  ;;  %p1022_p8 = scmp.lt.s32.totalorder %s76_s30, %s76_s30 }
  0x4c   :  { %p1018_p7 = scmp.ne.s32.totalorder %s76_s30, %s1017_s24  ;;  %p1023_p9 = scmp.lt.s32.totalorder %s1017_s24, %s1017_s24 }
  0x4e   :  { %p1024_p10 = por %p1023_p9, %p1022_p8 }
  0x50   :  { %p1025_p11 = pnand %p1024_p10, %p1018_p7 }
  0x52   :  { %1028 = shalt.err (!%p1025_p11)
}
  0x53   :  { %s1066_s3 = smov 128   ;;  %s1067_s19 = smov 8  }
  0x54   :  { %81 = dma.hbm_to_vmem [thread:$0]  %s1240_s7, 2048, %s76_s30, [#allocation9], %s1066_s3, %s1066_s3, %s1067_s19  }
  0x55   :  { %1051 = dma.done.wait [#allocation3], 64  }
  0x56   :  { %1052 = vsyncadd [#allocation3], 4294967232 }
  0x57   :  { %1053 = dma.done.wait [#allocation6], 3072  }
  0x58   :  { %1054 = vsyncadd [#allocation6], 4294964224 }
  0x59   :  { %1055 = dma.done.wait [#allocation9], 3072  }
  0x5a   :  { %1056 = vsyncadd [#allocation9], 4294964224  ;;  %v1068_v0 = vmov 0.0   ;;  %v855_v1 = vld [vmem:[#allocation5 + $0x40] sm:$0xff]   ;;  %v857_v3 = vld [vmem:[#allocation5 + $0x48] sm:$0xff]   ;;  %vm1069_vm0 = vmmov 0  }
  0x5b   :  { %802 = vmatprep.subr.bf16.mxu1 %v1068_v0  ;;  %v856_v2 = vld [vmem:[#allocation5] sm:$0xff]   ;;  %762 = vmatprep.subr.bf16.mxu0 %v855_v1  ;;  %v858_v4 = vld [vmem:[#allocation5 + $0x8] sm:$0xff]   ;;  %v859_v5 = vld [vmem:[#allocation5 + $0x50] sm:$0xff]  }
  0x5c   :  { %763 = vmatpush3.bf16.msra.mxu0 %v856_v2  ;;  %v860_v6 = vld [vmem:[#allocation5 + $0x10] sm:$0xff]   ;;  %v861_v7 = vld [vmem:[#allocation5 + $0x58] sm:$0xff]   ;;  %v863_v9 = vld [vmem:[#allocation5 + $0x60] sm:$0xff]   ;;  %818 = vmatprep.mubr.msk.bf16.mxu1 %vm1069_vm0, %v1068_v0 }
  0x5d   :  { %764 = vmatprep.subr.bf16.mxu0 %v857_v3  ;;  %v862_v8 = vld [vmem:[#allocation5 + $0x18] sm:$0xff]   ;;  %v864_v10 = vld [vmem:[#allocation5 + $0x20] sm:$0xff]   ;;  %v865_v11 = vld [vmem:[#allocation5 + $0x68] sm:$0xff]  }
  0x5e   :  { %v707_v12 = vld.sshfl [vmem:[#allocation2] sm:$0x33 pattern:$0x76325410]  ;;  %v871_v14 = vld [vmem:[#allocation7] sm:$0xff]   ;;  %v866_v15 = vld [vmem:[#allocation5 + $0x28] sm:$0xff]  }
  0x5f   :  { %v109_v13 = vcombine.high %v707_v12, %v707_v12  ;;  %803 = vmatpush3.bf16.msra.mxu1 %v871_v14  ;;  %v872_v17 = vld [vmem:[#allocation7 + $0x8] sm:$0xff]   ;;  %v867_v18 = vld [vmem:[#allocation5 + $0x70] sm:$0xff]   ;;  %v869_v20 = vld [vmem:[#allocation5 + $0x78] sm:$0xff]   ;;  %v112_v25 = vpack.c.bf16 %v707_v12, %v707_v12 }
  0x60   :  { %765 = vmatpush3.bf16.msra.mxu0 %v858_v4  ;;  %804 = vmatprep.subr.bf16.mxu1 %v1068_v0  ;;  %v868_v19 = vld [vmem:[#allocation5 + $0x30] sm:$0xff]   ;;  %v870_v22 = vld [vmem:[#allocation5 + $0x38] sm:$0xff]   ;;  %v875_v24 = vld [vmem:[#allocation7 + $0x20] sm:$0xff]  }
  0x61   :  { %766 = vmatprep.subr.bf16.mxu0 %v859_v5  ;;  %v113_v16 = vpack.c.bf16 %v109_v13, %v109_v13  ;;  %v873_v21 = vld [vmem:[#allocation7 + $0x10] sm:$0xff]   ;;  %v874_v23 = vld [vmem:[#allocation7 + $0x18] sm:$0xff]   ;;  %v876_v26 = vld [vmem:[#allocation7 + $0x28] sm:$0xff]  }
  0x62   :  { %v877_v27 = vld [vmem:[#allocation7 + $0x30] sm:$0xff]   ;;  %v878_v28 = vld [vmem:[#allocation7 + $0x38] sm:$0xff]   ;;  %v879_v29 = vld [vmem:[#allocation8] sm:$0xff]  }
  0x63   :  { %281 = vmatprep.mubr.bf16.mxu0 %v113_v16  ;;  %805 = vmatpush3.bf16.msra.mxu1 %v872_v17  ;;  %v880_v30 = vld [vmem:[#allocation8 + $0x8] sm:$0xff]   ;;  %v881_v31 = vld [vmem:[#allocation8 + $0x10] sm:$0xff]   ;;  %v882_v32 = vld [vmem:[#allocation8 + $0x18] sm:$0xff]  }
  0x64   :  { %767 = vmatpush3.bf16.msra.mxu0 %v860_v6  ;;  %806 = vmatprep.subr.bf16.mxu1 %v1068_v0  ;;  %v883_v33 = vld [vmem:[#allocation8 + $0x20] sm:$0xff]   ;;  %v884_v34 = vld [vmem:[#allocation8 + $0x28] sm:$0xff]   ;;  %v708_v36 = vld [vmem:[%s1235_s2] ss:$0 sm:$0xff]  ;;  %v1070_v6 = vmov 0  }
  0x65   :  { %768 = vmatprep.subr.bf16.mxu0 %v861_v7  ;;  %v885_v44 = vld [vmem:[#allocation8 + $0x30] sm:$0xff]   ;;  %v886_v45 = vld [vmem:[#allocation8 + $0x38] sm:$0xff]   ;;  %v887_v46 = vld [vmem:[#allocation10] ss:$8 sps:$4 sm:$0xff]  }
  0x66   :  { %v889_v47 = vld [vmem:[#allocation10 + $0x4] ss:$8 sps:$4 sm:$0xff]   ;;  %v892_v48 = vld [vmem:[#allocation10 + $0x14] ss:$8 sps:$4 sm:$0xff]   ;;  %v890_v49 = vld [vmem:[#allocation10 + $0x10] ss:$8 sps:$4 sm:$0xff]  }
  0x67   :  { %807 = vmatpush3.bf16.msra.mxu1 %v873_v21  ;;  %v895_v50 = vld [vmem:[#allocation10 + $0x24] ss:$8 sps:$4 sm:$0xff]   ;;  %v893_v51 = vld [vmem:[#allocation10 + $0x20] ss:$8 sps:$4 sm:$0xff]   ;;  %v898_v52 = vld [vmem:[#allocation10 + $0x34] ss:$8 sps:$4 sm:$0xff]  }
  0x68   :  { %769 = vmatpush3.bf16.msra.mxu0 %v862_v8  ;;  %808 = vmatprep.subr.bf16.mxu1 %v1068_v0  ;;  %v896_v53 = vld [vmem:[#allocation10 + $0x30] ss:$8 sps:$4 sm:$0xff]   ;;  %v901_v54 = vld [vmem:[#allocation10 + $0x44] ss:$8 sps:$4 sm:$0xff]   ;;  %v899_v55 = vld [vmem:[#allocation10 + $0x40] ss:$8 sps:$4 sm:$0xff]  }
  0x69   :  { %770 = vmatprep.subr.bf16.mxu0 %v863_v9  ;;  %v904_v56 = vld [vmem:[#allocation10 + $0x54] ss:$8 sps:$4 sm:$0xff]   ;;  %v902_v57 = vld [vmem:[#allocation10 + $0x50] ss:$8 sps:$4 sm:$0xff]   ;;  %v907_v58 = vld [vmem:[#allocation10 + $0x64] ss:$8 sps:$4 sm:$0xff]  }
  0x6a   :  { %v905_v59 = vld [vmem:[#allocation10 + $0x60] ss:$8 sps:$4 sm:$0xff]   ;;  %v725_v60 = vld [vmem:[%s1237_s4] ss:$0 sm:$0xff]  ;;  %v908_v5 = vld [vmem:[#allocation10 + $0x70] ss:$8 sps:$4 sm:$0xff]  }
  0x6b   :  { %809 = vmatpush3.bf16.msra.mxu1 %v874_v23  ;;  %v910_v4 = vld [vmem:[#allocation10 + $0x74] ss:$8 sps:$4 sm:$0xff]  }
  0x6c   :  { %771 = vmatpush3.bf16.msra.mxu0 %v864_v10  ;;  %810 = vmatprep.subr.bf16.mxu1 %v1068_v0  ;;  %v734_v7 = vld [vmem:[%s1239_s6] ss:$0 sm:$0xff]  ;;  %s1071_s6 = smov [#allocation11]  }
  0x6d   :  { %772 = vmatprep.subr.bf16.mxu0 %v865_v11 }
  0x6f   :  { %811 = vmatpush3.bf16.msra.mxu1 %v875_v24 }
  0x70   :  { %773 = vmatpush3.bf16.msra.mxu0 %v866_v15  ;;  %812 = vmatprep.subr.bf16.mxu1 %v1068_v0  ;;  %v535_v15 = vlaneseq }
  0x71   :  { %774 = vmatprep.subr.bf16.mxu0 %v867_v18  ;;  %v533_v18 = vld [vmem:[%s1241_s8] sm:$0x3]  ;;  %s696_s8 = sshll.u32 %s1071_s6, 4  ;;  %s697_s8 = int_to_ptr.vmem [resolvable:$true] %s696_s8 }
  0x72   :  { %v536_v16 = vshrl.u32 %v535_v15, 7  ;;  %s1029_s13 = scalar_lea.vmem %s697_s8, 64  ;;  %p1034_p13 = scmp.lt.s32.totalorder %s697_s8, %s697_s8 }
  0x73   :  { %813 = vmatpush3.bf16.msra.mxu1 %v876_v26  ;;  %p1030_p12 = scmp.ne.s32.totalorder %s697_s8, %s1029_s13  ;;  %p1035_p0 = scmp.lt.s32.totalorder %s1029_s13, %s1029_s13 }
  0x74   :  { %775 = vmatpush3.bf16.msra.mxu0 %v868_v19  ;;  %814 = vmatprep.subr.bf16.mxu1 %v1068_v0  ;;  %v537_v17 = vsub.s32 0, %v536_v16  ;;  %v541_v19 = vsub.s32 1, %v536_v16 }
  0x75   :  { %776 = vmatprep.subr.bf16.mxu0 %v869_v20  ;;  %p1036_p1 = por %p1035_p0, %p1034_p13 }
  0x76   :  { %v538_v20 = vrot.slane %v533_v18, %v537_v17  ;;  %v542_v21 = vrot.slane %v533_v18, %v541_v19 }
  0x77   :  { %815 = vmatpush3.bf16.msra.mxu1 %v877_v27  ;;  %p1037_p2 = pnand %p1036_p1, %p1030_p12 }
  0x78   :  { %777 = vmatpush3.bf16.msra.mxu0 %v870_v22  ;;  %816 = vmatprep.subr.bf16.mxu1 %v1068_v0 }
  0x79   :  { %822 = vmatprep.subr.bf16.mxu0 %v1068_v0 }
  0x7b   :  { %282 = vmatmul.mubr.bf16.vlgmr.msra.gmra.mrb[0].mxu0 %v112_v25  ;;  %817 = vmatpush3.bf16.msra.mxu1 %v878_v28 }
  0x7c   :  { %838 = vmatprep.mubr.msk.bf16.mxu0 %vm1069_vm0, %v1068_v0  ;;  %823 = vmatpush3.bf16.msra.mxu0 %v879_v29 }
  0x7d   :  { %824 = vmatprep.subr.bf16.mxu0 %v1068_v0  ;;  %625 = vmatprep.subr.bf16.mxu1 %v889_v47 }
  0x80   :  { %825 = vmatpush3.bf16.msra.mxu0 %v880_v30 }
  0x81   :  { %826 = vmatprep.subr.bf16.mxu0 %v1068_v0 }
  0x84   :  { %827 = vmatpush3.bf16.msra.mxu0 %v881_v31 }
  0x85   :  { %828 = vmatprep.subr.bf16.mxu0 %v1068_v0 }
  0x88   :  { %829 = vmatpush3.bf16.msra.mxu0 %v882_v32 }
  0x89   :  { %830 = vmatprep.subr.bf16.mxu0 %v1068_v0 }
  0x8c   :  { %831 = vmatpush3.bf16.msra.mxu0 %v883_v33 }
  0x8d   :  { %832 = vmatprep.subr.bf16.mxu0 %v1068_v0 }
  0x90   :  { %833 = vmatpush3.bf16.msra.mxu0 %v884_v34 }
  0x91   :  { %834 = vmatprep.subr.bf16.mxu0 %v1068_v0 }
  0x94   :  { %835 = vmatpush3.bf16.msra.mxu0 %v885_v44 }
  0x95   :  { %836 = vmatprep.subr.bf16.mxu0 %v1068_v0 }
  0x98   :  { %837 = vmatpush3.bf16.msra.mxu0 %v886_v45 }
 0x14e   :  { %v778_v35 = vpop.f32.mrb[0].mxu0 }
 0x14f   :  { %v779_v37 = vpop.f32.mrb[1].mxu0 }
 0x150   :  { %v780_v38 = vadd.f32 %v779_v37, %v778_v35  ;;  %v781_v39 = vpop.f32.mrb[2].mxu0 }
 0x151   :  { %v782_v40 = vpop.f32.mrb[3].mxu0 }
 0x152   :  { %v284_v41 = vadd.f32 %v780_v38, %v708_v36 }
 0x154   :  { %v289_v42 = vmax.f32 %v284_v41, 0.0 }
 0x156   :  { %v290_v43 = vpack.c.bf16 %v289_v42, %v289_v42 }
 0x158   :  { %819 = vmatmul.mubr.bf16.vlgmr.msra.gmra.mrb[0].mxu1 %v290_v43 }
 0x159   :  { %626 = vmatpush1.bf16.msra.mxu1 %v887_v46  ;;  %657 = vmatprep.mubr.bf16.mxu1 %v1070_v6 }
 0x15a   :  { %627 = vmatprep.subr.bf16.mxu1 %v892_v48 }
 0x15d   :  { %628 = vmatpush1.bf16.msra.mxu1 %v890_v49 }
 0x15e   :  { %629 = vmatprep.subr.bf16.mxu1 %v895_v50 }
 0x161   :  { %630 = vmatpush1.bf16.msra.mxu1 %v893_v51 }
 0x162   :  { %631 = vmatprep.subr.bf16.mxu1 %v898_v52 }
 0x165   :  { %632 = vmatpush1.bf16.msra.mxu1 %v896_v53 }
 0x166   :  { %633 = vmatprep.subr.bf16.mxu1 %v901_v54 }
 0x169   :  { %634 = vmatpush1.bf16.msra.mxu1 %v899_v55 }
 0x16a   :  { %635 = vmatprep.subr.bf16.mxu1 %v904_v56 }
 0x16d   :  { %636 = vmatpush1.bf16.msra.mxu1 %v902_v57 }
 0x16e   :  { %637 = vmatprep.subr.bf16.mxu1 %v907_v58 }
 0x171   :  { %638 = vmatpush1.bf16.msra.mxu1 %v905_v59 }
 0x172   :  { %639 = vmatprep.subr.bf16.mxu1 %v910_v4 }
 0x175   :  { %640 = vmatpush1.bf16.msra.mxu1 %v908_v5 }
 0x22b   :  { %v396_v61 = vpop.f32.mrb[0].mxu1 }
 0x22c   :  { %v397_v62 = vadd.f32 %v725_v60, %v396_v61  ;;  %v820_v63 = vpop.f32.mrb[1].mxu1 }
 0x22d   :  { %v399_v0 = vpop.f32.mrb[2].mxu1 }
 0x22e   :  { %v402_v1 = vmax.f32 %v397_v62, 0.0  ;;  %v821_v2 = vpop.f32.mrb[3].mxu1 }
 0x230   :  { %v403_v3 = vpack.c.bf16 %v402_v1, %v402_v1 }
 0x232   :  { %839 = vmatmul.mubr.bf16.vlgmr.msra.gmra.mrb[4].mxu0 %v403_v3 }
 0x305   :  { %v509_v8 = vpop.f32.mrb[4].mxu0 }
 0x306   :  { %v510_v9 = vadd.f32 %v734_v7, %v509_v8  ;;  %v840_v10 = vpop.f32.mrb[5].mxu0 }
 0x307   :  { %v512_v11 = vpop.f32.mrb[6].mxu0 }
 0x308   :  { %v515_v12 = vmax.f32 %v510_v9, 0.0  ;;  %v841_v13 = vpop.f32.mrb[7].mxu0 }
 0x30a   :  { %v516_v14 = vpack.c.bf16 %v515_v12, %v515_v12 }
 0x30c   :  { %658 = vmatmul.mubr.bf16.vlgmr.msra.gmra.mrb[4].mxu1 %v516_v14 }
 0x3df   :  { %v659_v22 = vpop.f32.mrb[4].mxu1 }
 0x3e0   :  { %v660_v23 = vadd.f32 %v659_v22, %v538_v20  ;;  %v661_v24 = vpop.f32.mrb[5].mxu1 }
 0x3e1   :  { %v662_v25 = vadd.f32 %v661_v24, %v542_v21  ;;  %v663_v26 = vpop.f32.mrb[6].mxu1 }
 0x3e2   :  { %v759_v27 = vmul.f32 -1.442695, %v660_v23  ;;  %v664_v28 = vpop.f32.mrb[7].mxu1 }
 0x3e3   :  { %v760_v29 = vmul.f32 -1.442695, %v662_v25 }
 0x3e4   :  { %911 = vpow2.f32 %v759_v27 }
 0x3e5   :  { %913 = vpow2.f32 %v760_v29 }
 0x3ee   :  { %v912_v30 = vpop.eup %911 }
 0x3ef   :  { %v914_v31 = vpop.eup %913  ;;  %v672_v32 = vadd.f32 1.0, %v912_v30 }
 0x3f0   :  { %v673_v33 = vadd.f32 1.0, %v914_v31 }
 0x3f1   :  { %915 = vrcp.f32 %v672_v32 }
 0x3f2   :  { %917 = vrcp.f32 %v673_v33 }
 0x3fb   :  { %v916_v34 = vpop.eup %915 }
 0x3fc   :  { %v918_v35 = vpop.eup %917 }
 0x3fd   :  { %v680_v36 = vcombine.low %v916_v34, %v918_v35 }
 0x3ff   :  { %761 = vst.sshfl [vmem:[#allocation11] sm:$0x33 pattern:$0x76325410] %v680_v36 }
 0x400   :  { %1040 = shalt.err (!%p1037_p2)
}
 0x401   :  { %s1041_s14 = scalar_lea.hbm %s1242_s9, 64 }
 0x402   :  { %p1042_p3 = scmp.ne.s32.totalorder %s1242_s9, %s1041_s14  ;;  %p1045_p4 = scmp.lt.u32.totalorder %s1041_s14, %s1242_s9 }
 0x404   :  { %p1047_p5 = pnand %p1045_p4, %p1042_p3 }
 0x406   :  { %1050 = shalt.err (!%p1047_p5)
}
 0x407   :  { %699 = dma.vmem_to_hbm [thread:$0]  %s697_s8, 64, %s1242_s9, [#allocation4]  }
 0x408   :  { %1057 = dma.done.wait [#allocation4], 64  }
 0x409   :  { %1058 = vsyncadd [#allocation4], 4294967232 }
 0x40a   :  { %703 = vsyncpa [#allocation3], 1 }
 0x40b   :  { %704 = vsyncpa [#allocation6], 1 }
 0x40c   :  { %705 = vsyncpa [#allocation9], 1 }
 0x40d   :  { %706 = vsyncpa [#allocation4], 1 }

</bundles_post_ra>
